<compile_context>
chip_gen: v7x
topology: tpu7x:2x2x1
jax: 0.10.0
libtpu: 0.0.40
codegen_flags: <defaults>
</compile_context>

<pallas_src>
import functools

import jax
import jax.numpy as jnp
from jax.experimental import pallas as pl
from jax.experimental.pallas import tpu as pltpu

LANE = 128    # TPU lane width; hidden (32) and act_count are zero-padded to this
HIDDEN = 32


def _round_up(a, m):
    return ((a + m - 1) // m) * m


def pnet_kernel(x_ref, w_ref, b_ref, o_ref, *, d_in):
    """Fused 4-layer MLP on one batch tile.

    x_ref: [TILE_B, d_in]          compute dtype (bf16)
    w_ref: [d_in + 3*LANE, LANE]   packed, zero-padded weight slab (bf16)
    b_ref: [4, LANE]               packed, zero-padded biases (f32)
    o_ref: [TILE_B, LANE]          f32; only the first act_count lanes are real
    """
    cdt = w_ref.dtype
    h = x_ref[...]
    off = 0
    for li, rows in enumerate((d_in, LANE, LANE, LANE)):
        w = w_ref[off:off + rows, :]                       # static slice: free
        h = jnp.dot(h.astype(cdt), w, preferred_element_type=jnp.float32)
        h = h + b_ref[li:li + 1, :]                        # f32 bias add
        if li < 3:
            h = jnp.maximum(h, 0.0)                        # f32 ReLU
        off += rows
    o_ref[...] = h.astype(o_ref.dtype)                     # lane-dense [TILE_B,128] store


def pnet_forward(x, w_slab, b_slab, act_count, *, tile_b=2048):
    """x: [B, D] (any float dtype); w_slab/b_slab from pack_pnet_params."""
    B, D = x.shape
    cdt = w_slab.dtype
    x = x.astype(cdt)                      # halve HBM traffic on the dominant stream

    # Batch tile: multiple of 8 sublanes; pad B up to a multiple of the tile.
    tile_b = _round_up(min(tile_b, _round_up(B, 8)), 8)
    b_pad = _round_up(B, tile_b)
    if b_pad != B:
        x = jnp.pad(x, ((0, b_pad - B), (0, 0)))

    itemsize = jnp.dtype(cdt).itemsize
    cost = pl.CostEstimate(
        flops=2 * b_pad * (D * LANE + 3 * LANE * LANE),
        transcendentals=0,
        bytes_accessed=(b_pad * D * itemsize            # x
                        + w_slab.size * itemsize        # weights (once)
                        + b_slab.size * 4               # biases (once)
                        + b_pad * LANE * 4),            # output
    )

    out = pl.pallas_call(
        functools.partial(pnet_kernel, d_in=D),
        out_shape=jax.ShapeDtypeStruct((b_pad, LANE), jnp.float32),
        grid=(b_pad // tile_b,),
        in_specs=[
            pl.BlockSpec((tile_b, D), lambda i: (i, 0)),        # batch-tiled x
            pl.BlockSpec(w_slab.shape, lambda i: (0, 0)),       # resident weight slab
            pl.BlockSpec(b_slab.shape, lambda i: (0, 0)),       # resident bias slab
        ],
        out_specs=pl.BlockSpec((tile_b, LANE), lambda i: (i, 0)),
        compiler_params=pltpu.CompilerParams(
            dimension_semantics=("parallel",)),                  # 2 TCs on v7x
        cost_estimate=cost,
    )(x, w_slab, b_slab)
    # TODO(synk): for tiny-B rollout loops, keep the packed weights resident across
    # calls (cross-call prefetch) instead of re-issuing the weight DMA every step.
    return out[:B, :act_count]


def init_pnet_params(key, flat_obs_dim, act_count):
    """Orthogonal weights (mirrors init_orthogonal on nn.Linear), zero biases.
    Weights returned per-layer as [in, out] (transposed from PyTorch [out, in])."""
    dims = [flat_obs_dim, HIDDEN, HIDDEN, HIDDEN, act_count]
    orth = jax.nn.initializers.orthogonal()
    keys = jax.random.split(key, len(dims) - 1)
    ws, bs = [], []
    for k, d_in, d_out in zip(keys, dims[:-1], dims[1:]):
        w_pt = orth(k, (d_out, d_in), jnp.float32)   # PyTorch layout
        ws.append(jnp.transpose(w_pt))               # [in, out]
        bs.append(jnp.zeros((d_out,), jnp.float32))
    return ws, bs


def pack_pnet_params(ws, bs, compute_dtype=jnp.bfloat16):
    """Pack weights into one [D + 3*LANE, LANE] slab and biases into [4, LANE].

    Out-dims (32 / act_count) are zero-padded to 128 lanes; the in-dims of
    layers 2-4 are zero-padded to 128 so each layer consumes the previous
    layer's padded activations directly (the pad lanes are exactly 0)."""
    d_in = ws[0].shape[0]
    blocks = [jnp.zeros((d_in, LANE), jnp.float32).at[:, :ws[0].shape[1]].set(ws[0])]
    for w in ws[1:]:
        blk = jnp.zeros((LANE, LANE), jnp.float32).at[:w.shape[0], :w.shape[1]].set(w)
        blocks.append(blk)
    w_slab = jnp.concatenate(blocks, axis=0).astype(compute_dtype)

    b_slab = jnp.zeros((4, LANE), jnp.float32)
    for i, b in enumerate(bs):
        b_slab = b_slab.at[i, :b.shape[0]].set(b)
    return w_slab, b_slab


def pnet_reference(x, w_slab, b_slab, d_in, act_count):
    """Pure-JAX reference using the same packed (bf16-rounded) parameters."""
    cdt = w_slab.dtype
    h = x.astype(cdt)
    off = 0
    for li, rows in enumerate((d_in, LANE, LANE, LANE)):
        w = w_slab[off:off + rows, :]
        h = jnp.dot(h.astype(cdt), w, preferred_element_type=jnp.float32)
        h = h + b_slab[li:li + 1, :]
        if li < 3:
            h = jnp.maximum(h, 0.0)
        off += rows
    return h[:, :act_count]


if __name__ == "__main__":
    key = jax.random.PRNGKey(0)
    k_x, k_p = jax.random.split(key)

    # obs_shape = (4, 4, 4) -> flat_obs_dim = 64; act_count = 8; batch = 8.
    # forward() consumes an already-flattened observation tensor [B, flat_obs_dim].
    B, flat_obs_dim, act_count = 8, 64, 8
    x = jax.random.normal(k_x, (B, flat_obs_dim), dtype=jnp.float32)

    ws, bs = init_pnet_params(k_p, flat_obs_dim, act_count)
    w_slab, b_slab = pack_pnet_params(ws, bs, compute_dtype=jnp.bfloat16)

    out = pnet_forward(x, w_slab, b_slab, act_count, tile_b=2048)
    out = jax.block_until_ready(out)

    ref = pnet_reference(x, w_slab, b_slab, flat_obs_dim, act_count)
    assert out.shape == (B, act_count)
    assert jnp.allclose(out, ref, atol=5e-3, rtol=5e-3), "mismatch vs reference"
    print("KERNEL_OK")
</pallas_src>

<mosaic_0001>
module attributes {stable_mosaic.version = 11 : i64} {
  func.func @pnet_kernel(%arg0: i32, %arg1: memref<8x64xbf16, #tpu.memory_space<vmem>>, %arg2: memref<448x128xbf16, #tpu.memory_space<vmem>>, %arg3: memref<4x128xf32, #tpu.memory_space<vmem>>, %arg4: memref<8x128xf32, #tpu.memory_space<vmem>>) attributes {dimension_semantics = [#tpu.dimension_semantics<parallel>], iteration_bounds = array<i64: 1>, scalar_prefetch = 0 : i64, scratch_operands = 0 : i64, tpu.core_type = #tpu.core_type<tc>, window_params = [{transform_indices = @transform_0, window_bounds = array<i64: 8, 64>}, {pipeline_mode = #tpu.pipeline_mode<synchronous>, transform_indices = @transform_1, window_bounds = array<i64: 448, 128>}, {pipeline_mode = #tpu.pipeline_mode<synchronous>, transform_indices = @transform_2, window_bounds = array<i64: 4, 128>}, {transform_indices = @transform_3, window_bounds = array<i64: 8, 128>}]} {
    %c0 = arith.constant 0 : index
    %c0_0 = arith.constant 0 : index
    %0 = vector.load %arg1[%c0, %c0_0] : memref<8x64xbf16, #tpu.memory_space<vmem>>, vector<8x64xbf16>
    %c0_1 = arith.constant 0 : index
    %c0_2 = arith.constant 0 : index
    %1 = vector.load %arg2[%c0_1, %c0_2] : memref<448x128xbf16, #tpu.memory_space<vmem>>, vector<64x128xbf16>
    %cst = arith.constant dense<0.000000e+00> : vector<8x128xf32>
    %2 = tpu.matmul %0, %1, %cst {dimension_numbers = #tpu.dot_dimension_numbers<[1], [0], [0], [1], [0, 0, 1, 1], [], []>} : vector<8x64xbf16>, vector<64x128xbf16>, vector<8x128xf32> -> vector<8x128xf32>
    %c0_3 = arith.constant 0 : index
    %c0_4 = arith.constant 0 : index
    %3 = vector.load %arg3[%c0_3, %c0_4] : memref<4x128xf32, #tpu.memory_space<vmem>>, vector<1x128xf32>
    %4 = vector.broadcast %3 : vector<1x128xf32> to vector<8x128xf32>
    %5 = arith.addf %2, %4 : vector<8x128xf32>
    %cst_5 = arith.constant 0.000000e+00 : f32
    %6 = vector.broadcast %cst_5 : f32 to vector<8x128xf32>
    %7 = arith.maximumf %5, %6 : vector<8x128xf32>
    %c64 = arith.constant 64 : index
    %c0_6 = arith.constant 0 : index
    %8 = vector.load %arg2[%c64, %c0_6] : memref<448x128xbf16, #tpu.memory_space<vmem>>, vector<128x128xbf16>
    %9 = arith.truncf %7 : vector<8x128xf32> to vector<8x128xbf16>
    %cst_7 = arith.constant dense<0.000000e+00> : vector<8x128xf32>
    %10 = tpu.matmul %9, %8, %cst_7 {dimension_numbers = #tpu.dot_dimension_numbers<[1], [0], [0], [1], [0, 0, 1, 1], [], []>} : vector<8x128xbf16>, vector<128x128xbf16>, vector<8x128xf32> -> vector<8x128xf32>
    %c1 = arith.constant 1 : index
    %c0_8 = arith.constant 0 : index
    %11 = vector.load %arg3[%c1, %c0_8] : memref<4x128xf32, #tpu.memory_space<vmem>>, vector<1x128xf32>
    %12 = vector.broadcast %11 : vector<1x128xf32> to vector<8x128xf32>
    %13 = arith.addf %10, %12 : vector<8x128xf32>
    %cst_9 = arith.constant 0.000000e+00 : f32
    %14 = vector.broadcast %cst_9 : f32 to vector<8x128xf32>
    %15 = arith.maximumf %13, %14 : vector<8x128xf32>
    %c192 = arith.constant 192 : index
    %c0_10 = arith.constant 0 : index
    %16 = vector.load %arg2[%c192, %c0_10] : memref<448x128xbf16, #tpu.memory_space<vmem>>, vector<128x128xbf16>
    %17 = arith.truncf %15 : vector<8x128xf32> to vector<8x128xbf16>
    %cst_11 = arith.constant dense<0.000000e+00> : vector<8x128xf32>
    %18 = tpu.matmul %17, %16, %cst_11 {dimension_numbers = #tpu.dot_dimension_numbers<[1], [0], [0], [1], [0, 0, 1, 1], [], []>} : vector<8x128xbf16>, vector<128x128xbf16>, vector<8x128xf32> -> vector<8x128xf32>
    %c2 = arith.constant 2 : index
    %c0_12 = arith.constant 0 : index
    %19 = vector.load %arg3[%c2, %c0_12] : memref<4x128xf32, #tpu.memory_space<vmem>>, vector<1x128xf32>
    %20 = vector.broadcast %19 : vector<1x128xf32> to vector<8x128xf32>
    %21 = arith.addf %18, %20 : vector<8x128xf32>
    %cst_13 = arith.constant 0.000000e+00 : f32
    %22 = vector.broadcast %cst_13 : f32 to vector<8x128xf32>
    %23 = arith.maximumf %21, %22 : vector<8x128xf32>
    %c320 = arith.constant 320 : index
    %c0_14 = arith.constant 0 : index
    %24 = vector.load %arg2[%c320, %c0_14] : memref<448x128xbf16, #tpu.memory_space<vmem>>, vector<128x128xbf16>
    %25 = arith.truncf %23 : vector<8x128xf32> to vector<8x128xbf16>
    %cst_15 = arith.constant dense<0.000000e+00> : vector<8x128xf32>
    %26 = tpu.matmul %25, %24, %cst_15 {dimension_numbers = #tpu.dot_dimension_numbers<[1], [0], [0], [1], [0, 0, 1, 1], [], []>} : vector<8x128xbf16>, vector<128x128xbf16>, vector<8x128xf32> -> vector<8x128xf32>
    %c3 = arith.constant 3 : index
    %c0_16 = arith.constant 0 : index
    %27 = vector.load %arg3[%c3, %c0_16] : memref<4x128xf32, #tpu.memory_space<vmem>>, vector<1x128xf32>
    %28 = vector.broadcast %27 : vector<1x128xf32> to vector<8x128xf32>
    %29 = arith.addf %26, %28 : vector<8x128xf32>
    %c0_17 = arith.constant 0 : index
    %c0_18 = arith.constant 0 : index
    %30 = vector.load %arg4[%c0_17, %c0_18] : memref<8x128xf32, #tpu.memory_space<vmem>>, vector<8x128xf32>
    tpu.vector_store %arg4[%c0_17, %c0_18], %29 {strides = array<i32>} : memref<8x128xf32, #tpu.memory_space<vmem>>, vector<8x128xf32>,
    return
  }
  func.func @transform_0(%arg0: i32) -> (i32, i32) {
    %c0_i32 = arith.constant 0 : i32
    %c0_i32_0 = arith.constant 0 : i32
    return %arg0, %c0_i32 : i32, i32
  }
  func.func @transform_1(%arg0: i32) -> (i32, i32) {
    %c0_i32 = arith.constant 0 : i32
    %c0_i32_0 = arith.constant 0 : i32
    %c0_i32_1 = arith.constant 0 : i32
    return %c0_i32, %c0_i32_0 : i32, i32
  }
  func.func @transform_2(%arg0: i32) -> (i32, i32) {
    %c0_i32 = arith.constant 0 : i32
    %c0_i32_0 = arith.constant 0 : i32
    %c0_i32_1 = arith.constant 0 : i32
    return %c0_i32, %c0_i32_0 : i32, i32
  }
  func.func @transform_3(%arg0: i32) -> (i32, i32) {
    %c0_i32 = arith.constant 0 : i32
    %c0_i32_0 = arith.constant 0 : i32
    return %arg0, %c0_i32 : i32, i32
  }
}

</mosaic_0001>

<bundles_post_ra>
// kernel: tpu_custom_call.1
= control target key start
LH: loop header
LB: loop body
LE: loop exit
PB: predicated region body
PF: predicated region fallthrough
CT: control target
= control target key end

     0   :  { %8 = vsyncpa [#allocation3], 0  ;;  %s836_s0 = inlined_call_operand.hbm [shape: bf16[8,64], index: 0, kind: input, shape index: {}]   ;;  %s837_s1 = inlined_call_operand.hbm [shape: bf16[448,128], index: 1, kind: input, shape index: {}]   ;;  %s838_s2 = inlined_call_operand.vmem [shape: f32[4,128], index: 2, kind: input, shape index: {}]   ;;  %s839_s3 = inlined_call_operand.hbm [shape: f32[8,128], index: 3, kind: output, shape index: {}]  }
   0x1   :  { %9 = vsyncpa [#allocation6], 0 }
   0x2   :  { %10 = vsyncpa [#allocation4], 0  ;;  %s718_s12 = smov [#allocation2]   ;;  %s719_s14 = smov [#allocation5]  }
   0x3   :  { %s17_s13 = sshll.u32 %s718_s12, 4  ;;  %s26_s15 = sshll.u32 %s719_s14, 4  ;;  %s18_s13 = int_to_ptr.vmem [resolvable:$true] %s17_s13  ;;  %s745_s15 = int_to_ptr.vmem [resolvable:$true] %s26_s15 }
   0x4   :  { %s646_s18 = scalar_lea.hbm %s836_s0, 64 }
   0x5   :  { %p647_p0 = scmp.ne.s32.totalorder %s836_s0, %s646_s18  ;;  %p650_p1 = scmp.lt.u32.totalorder %s646_s18, %s836_s0 }
   0x7   :  { %p652_p2 = pnand %p650_p1, %p647_p0 }
   0x9   :  { %655 = shalt.err (!%p652_p2)
}
   0xa   :  { %s656_s23 = scalar_lea.vmem %s18_s13, 64  ;;  %p661_p4 = scmp.lt.s32.totalorder %s18_s13, %s18_s13 }
   0xb   :  { %p657_p3 = scmp.ne.s32.totalorder %s18_s13, %s656_s23  ;;  %p662_p5 = scmp.lt.s32.totalorder %s656_s23, %s656_s23 }
   0xd   :  { %p663_p6 = por %p662_p5, %p661_p4 }
   0xf   :  { %p664_p7 = pnand %p663_p6, %p657_p3 }
  0x11   :  { %667 = shalt.err (!%p664_p7)
}
  0x12   :  { %20 = dma.hbm_to_vmem [thread:$0]  %s836_s0, 64, %s18_s13, [#allocation3]  }
  0x13   :  { %s668_s28 = scalar_lea.hbm %s837_s1, 3584 }
  0x14   :  { %p669_p8 = scmp.ne.s32.totalorder %s837_s1, %s668_s28  ;;  %p672_p9 = scmp.lt.u32.totalorder %s668_s28, %s837_s1 }
  0x16   :  { %p674_p10 = pnand %p672_p9, %p669_p8 }
  0x18   :  { %677 = shalt.err (!%p674_p10)
}
  0x19   :  { %s678_s6 = scalar_lea.vmem %s745_s15, 3584  ;;  %p683_p12 = scmp.lt.s32.totalorder %s745_s15, %s745_s15 }
  0x1a   :  { %p679_p11 = scmp.ne.s32.totalorder %s745_s15, %s678_s6  ;;  %p684_p13 = scmp.lt.s32.totalorder %s678_s6, %s678_s6 }
  0x1c   :  { %p685_p0 = por %p684_p13, %p683_p12 }
  0x1e   :  { %p686_p1 = pnand %p685_p0, %p679_p11 }
  0x20   :  { %689 = shalt.err (!%p686_p1)
}
  0x21   :  { %s720_s0 = smov 64   ;;  %s721_s7 = smov 4  }
  0x22   :  { %32 = dma.hbm_to_vmem [thread:$0]  %s837_s1, 3584, %s745_s15, [#allocation6], %s720_s0, %s720_s0, %s721_s7  }
  0x23   :  { %712 = dma.done.wait [#allocation3], 64  }
  0x24   :  { %713 = vsyncadd [#allocation3], 4294967232 }
  0x25   :  { %714 = dma.done.wait [#allocation6], 3584  }
  0x26   :  { %715 = vsyncadd [#allocation6], 4294963712  ;;  %v722_v0 = vmov 0.0   ;;  %vm723_vm0 = vmmov 0   ;;  %v618_v1 = vld [vmem:[#allocation5] sm:$0xff]   ;;  %v619_v2 = vld [vmem:[#allocation5 + $0x8] sm:$0xff]  }
  0x27   :  { %539 = vmatprep.subr.bf16.mxu0 %v722_v0  ;;  %547 = vmatprep.mubr.msk.bf16.mxu0 %vm723_vm0, %v722_v0  ;;  %v622_v3 = vld [vmem:[#allocation5 + $0x20] sm:$0xff]   ;;  %v620_v4 = vld [vmem:[#allocation5 + $0x10] sm:$0xff]   ;;  %v623_v5 = vld [vmem:[#allocation5 + $0x28] sm:$0xff]   ;;  %vm80_vm1 = vcmask 523264   ;;  %s724_s17 = smov [#allocation7]  }
  0x28   :  { %551 = vmatprep.subr.bf16.mxu1 %v722_v0  ;;  %567 = vmatprep.mubr.msk.bf16.mxu1 %vm723_vm0, %v722_v0  ;;  %v621_v6 = vld [vmem:[#allocation5 + $0x18] sm:$0xff]   ;;  %v624_v7 = vld [vmem:[#allocation5 + $0x30] sm:$0xff]   ;;  %v626_v10 = vld [vmem:[#allocation5 + $0x40] sm:$0xff]   ;;  %s464_s18 = sshll.u32 %s724_s17, 4  ;;  %s465_s18 = int_to_ptr.vmem [resolvable:$true] %s464_s18 }
  0x29   :  { %540 = vmatpush3.bf16.msra.mxu0 %v618_v1  ;;  %552 = vmatpush3.bf16.msra.mxu1 %v622_v3  ;;  %v42_v8 = vld [vmem:[#allocation2] sm:$0xf]  ;;  %v627_v11 = vld [vmem:[#allocation5 + $0x48] sm:$0xff]   ;;  %v628_v12 = vld [vmem:[#allocation5 + $0x50] sm:$0xff]   ;;  %s690_s19 = scalar_lea.vmem %s465_s18, 128  ;;  %p695_p3 = scmp.lt.s32.totalorder %s465_s18, %s465_s18 }
  0x2a   :  { %541 = vmatprep.subr.bf16.mxu0 %v722_v0  ;;  %553 = vmatprep.subr.bf16.mxu1 %v722_v0  ;;  %v625_v9 = vld [vmem:[#allocation5 + $0x38] sm:$0xff]   ;;  %v630_v14 = vld [vmem:[#allocation5 + $0x60] sm:$0xff]   ;;  %v631_v15 = vld [vmem:[#allocation5 + $0x68] sm:$0xff]   ;;  %p691_p2 = scmp.ne.s32.totalorder %s465_s18, %s690_s19  ;;  %p696_p4 = scmp.lt.s32.totalorder %s690_s19, %s690_s19 }
  0x2b   :  { %v629_v13 = vld [vmem:[#allocation5 + $0x58] sm:$0xff]   ;;  %v632_v16 = vld [vmem:[#allocation5 + $0x70] sm:$0xff]   ;;  %v634_v18 = vld [vmem:[#allocation5 + $0x80] sm:$0xff]  }
  0x2c   :  { %v633_v17 = vld [vmem:[#allocation5 + $0x78] sm:$0xff]   ;;  %v635_v19 = vld [vmem:[#allocation5 + $0x88] sm:$0xff]   ;;  %v636_v28 = vld [vmem:[#allocation5 + $0x90] sm:$0xff]   ;;  %p697_p5 = por %p696_p4, %p695_p3 }
  0x2d   :  { %542 = vmatpush3.bf16.msra.mxu0 %v619_v2  ;;  %554 = vmatpush3.bf16.msra.mxu1 %v623_v5  ;;  %v474_v20 = vld [vmem:[%s838_s2] ss:$0 sm:$0xff]  ;;  %v638_v30 = vld [vmem:[#allocation5 + $0xa0] sm:$0xff]   ;;  %v639_v31 = vld [vmem:[#allocation5 + $0xa8] sm:$0xff]  }
  0x2e   :  { %543 = vmatprep.subr.bf16.mxu0 %v722_v0  ;;  %555 = vmatprep.subr.bf16.mxu1 %v722_v0  ;;  %v637_v29 = vld [vmem:[#allocation5 + $0x98] sm:$0xff]   ;;  %v640_v32 = vld [vmem:[#allocation5 + $0xb0] sm:$0xff]   ;;  %v642_v34 = vld [vmem:[#allocation5 + $0xc0] sm:$0xff]   ;;  %p698_p6 = pnand %p697_p5, %p691_p2 }
  0x2f   :  { %v641_v33 = vld [vmem:[#allocation5 + $0xb8] sm:$0xff]   ;;  %v643_v35 = vld [vmem:[#allocation5 + $0xc8] sm:$0xff]   ;;  %v644_v44 = vld [vmem:[#allocation5 + $0xd0] sm:$0xff]  }
  0x30   :  { %v480_v36 = vld [vmem:[%s838_s2 + $0x1] ss:$0 sm:$0xff]  ;;  %v489_v46 = vld [vmem:[%s838_s2 + $0x2] ss:$0 sm:$0xff]  ;;  %v498_v54 = vld [vmem:[%s838_s2 + $0x3] ss:$0 sm:$0xff] }
  0x31   :  { %544 = vmatpush3.bf16.msra.mxu0 %v620_v4  ;;  %556 = vmatpush3.bf16.msra.mxu1 %v624_v7  ;;  %v645_v45 = vld [vmem:[#allocation5 + $0xd8] sm:$0xff]  }
  0x32   :  { %545 = vmatprep.subr.bf16.mxu0 %v722_v0  ;;  %557 = vmatprep.subr.bf16.mxu1 %v722_v0 }
  0x35   :  { %546 = vmatpush3.bf16.msra.mxu0 %v621_v6  ;;  %558 = vmatpush3.bf16.msra.mxu1 %v625_v9 }
  0x36   :  { %571 = vmatprep.subr.bf16.mxu0 %v722_v0  ;;  %559 = vmatprep.subr.bf16.mxu1 %v722_v0 }
  0x38   :  { %548 = vmatmul.mubr.msk.bf16.vlgmr.msra.gmra.mrb[0].mxu0 %vm80_vm1, %v42_v8 }
  0x39   :  { %587 = vmatprep.mubr.msk.bf16.mxu0 %vm723_vm0, %v722_v0  ;;  %560 = vmatpush3.bf16.msra.mxu1 %v626_v10 }
  0x3a   :  { %561 = vmatprep.subr.bf16.mxu1 %v722_v0  ;;  %572 = vmatpush3.bf16.msra.mxu0 %v630_v14 }
  0x3b   :  { %573 = vmatprep.subr.bf16.mxu0 %v722_v0 }
  0x3d   :  { %562 = vmatpush3.bf16.msra.mxu1 %v627_v11 }
  0x3e   :  { %563 = vmatprep.subr.bf16.mxu1 %v722_v0  ;;  %574 = vmatpush3.bf16.msra.mxu0 %v631_v15 }
  0x3f   :  { %575 = vmatprep.subr.bf16.mxu0 %v722_v0 }
  0x41   :  { %564 = vmatpush3.bf16.msra.mxu1 %v628_v12 }
  0x42   :  { %565 = vmatprep.subr.bf16.mxu1 %v722_v0  ;;  %576 = vmatpush3.bf16.msra.mxu0 %v632_v16 }
  0x43   :  { %577 = vmatprep.subr.bf16.mxu0 %v722_v0 }
  0x45   :  { %566 = vmatpush3.bf16.msra.mxu1 %v629_v13 }
  0x46   :  { %591 = vmatprep.subr.bf16.mxu1 %v722_v0  ;;  %578 = vmatpush3.bf16.msra.mxu0 %v633_v17 }
  0x47   :  { %579 = vmatprep.subr.bf16.mxu0 %v722_v0 }
  0x4a   :  { %580 = vmatpush3.bf16.msra.mxu0 %v634_v18 }
  0x4b   :  { %581 = vmatprep.subr.bf16.mxu0 %v722_v0 }
  0x4e   :  { %582 = vmatpush3.bf16.msra.mxu0 %v635_v19 }
  0x4f   :  { %583 = vmatprep.subr.bf16.mxu0 %v722_v0 }
  0x52   :  { %584 = vmatpush3.bf16.msra.mxu0 %v636_v28 }
  0x53   :  { %585 = vmatprep.subr.bf16.mxu0 %v722_v0 }
  0x56   :  { %586 = vmatpush3.bf16.msra.mxu0 %v637_v29 }
 0x10b   :  { %v118_v21 = vpop.f32.mrb[0].mxu0 }
 0x10c   :  { %v119_v22 = vadd.f32 %v474_v20, %v118_v21  ;;  %v549_v23 = vpop.f32.mrb[1].mxu0 }
 0x10d   :  { %v121_v24 = vpop.f32.mrb[2].mxu0 }
 0x10e   :  { %v124_v25 = vmax.f32 %v119_v22, 0.0  ;;  %v550_v26 = vpop.f32.mrb[3].mxu0 }
 0x110   :  { %v141_v27 = vpack.c.bf16 %v124_v25, %v124_v25 }
 0x112   :  { %568 = vmatmul.mubr.bf16.vlgmr.msra.gmra.mrb[0].mxu1 %v141_v27 }
 0x113   :  { %607 = vmatprep.mubr.msk.bf16.mxu1 %vm723_vm0, %v722_v0  ;;  %592 = vmatpush3.bf16.msra.mxu1 %v638_v30 }
 0x114   :  { %593 = vmatprep.subr.bf16.mxu1 %v722_v0 }
 0x117   :  { %594 = vmatpush3.bf16.msra.mxu1 %v639_v31 }
 0x118   :  { %595 = vmatprep.subr.bf16.mxu1 %v722_v0 }
 0x11b   :  { %596 = vmatpush3.bf16.msra.mxu1 %v640_v32 }
 0x11c   :  { %597 = vmatprep.subr.bf16.mxu1 %v722_v0 }
 0x11f   :  { %598 = vmatpush3.bf16.msra.mxu1 %v641_v33 }
 0x120   :  { %599 = vmatprep.subr.bf16.mxu1 %v722_v0 }
 0x123   :  { %600 = vmatpush3.bf16.msra.mxu1 %v642_v34 }
 0x124   :  { %601 = vmatprep.subr.bf16.mxu1 %v722_v0 }
 0x127   :  { %602 = vmatpush3.bf16.msra.mxu1 %v643_v35 }
 0x128   :  { %603 = vmatprep.subr.bf16.mxu1 %v722_v0 }
 0x12b   :  { %604 = vmatpush3.bf16.msra.mxu1 %v644_v44 }
 0x12c   :  { %605 = vmatprep.subr.bf16.mxu1 %v722_v0 }
 0x12f   :  { %606 = vmatpush3.bf16.msra.mxu1 %v645_v45 }
 0x1e5   :  { %v229_v37 = vpop.f32.mrb[0].mxu1 }
 0x1e6   :  { %v230_v38 = vadd.f32 %v480_v36, %v229_v37  ;;  %v569_v39 = vpop.f32.mrb[1].mxu1 }
 0x1e7   :  { %v232_v40 = vpop.f32.mrb[2].mxu1 }
 0x1e8   :  { %v235_v41 = vmax.f32 %v230_v38, 0.0  ;;  %v570_v42 = vpop.f32.mrb[3].mxu1 }
 0x1ea   :  { %v252_v43 = vpack.c.bf16 %v235_v41, %v235_v41 }
 0x1ec   :  { %588 = vmatmul.mubr.bf16.vlgmr.msra.gmra.mrb[4].mxu0 %v252_v43 }
 0x2bf   :  { %v340_v47 = vpop.f32.mrb[4].mxu0 }
 0x2c0   :  { %v341_v48 = vadd.f32 %v489_v46, %v340_v47  ;;  %v589_v49 = vpop.f32.mrb[5].mxu0 }
 0x2c1   :  { %v343_v50 = vpop.f32.mrb[6].mxu0 }
 0x2c2   :  { %v346_v51 = vmax.f32 %v341_v48, 0.0  ;;  %v590_v52 = vpop.f32.mrb[7].mxu0 }
 0x2c4   :  { %v363_v53 = vpack.c.bf16 %v346_v51, %v346_v51 }
 0x2c6   :  { %608 = vmatmul.mubr.bf16.vlgmr.msra.gmra.mrb[4].mxu1 %v363_v53 }
 0x399   :  { %v451_v55 = vpop.f32.mrb[4].mxu1 }
 0x39a   :  { %v452_v56 = vadd.f32 %v498_v54, %v451_v55  ;;  %v609_v57 = vpop.f32.mrb[5].mxu1 }
 0x39b   :  { %v454_v58 = vpop.f32.mrb[6].mxu1 }
 0x39c   :  { %457 = vst [vmem:[#allocation7] sm:$0xff] %v452_v56  ;;  %v610_v59 = vpop.f32.mrb[7].mxu1 }
 0x39d   :  { %701 = shalt.err (!%p698_p6)
}
 0x39e   :  { %s702_s2 = scalar_lea.hbm %s839_s3, 128 }
 0x39f   :  { %p703_p7 = scmp.ne.s32.totalorder %s839_s3, %s702_s2  ;;  %p706_p8 = scmp.lt.u32.totalorder %s702_s2, %s839_s3 }
 0x3a1   :  { %p708_p9 = pnand %p706_p8, %p703_p7 }
 0x3a3   :  { %711 = shalt.err (!%p708_p9)
}
 0x3a4   :  { %467 = dma.vmem_to_hbm [thread:$0]  %s465_s18, 128, %s839_s3, [#allocation4]  }
 0x3a5   :  { %716 = dma.done.wait [#allocation4], 128  }
 0x3a6   :  { %717 = vsyncadd [#allocation4], 4294967168 }
 0x3a7   :  { %471 = vsyncpa [#allocation3], 1 }
 0x3a8   :  { %472 = vsyncpa [#allocation6], 1 }
 0x3a9   :  { %473 = vsyncpa [#allocation4], 1 }

</bundles_post_ra>
